<compile_context>
chip_gen: v6e
topology: v6e:2x2x1
jax: 0.10.0
libtpu: 0.0.40
codegen_flags: <defaults>
</compile_context>

<pallas_src>
import jax
import jax.numpy as jnp
from jax.experimental import pallas as pl
from jax.experimental.pallas import tpu as pltpu

DROP_P = 0.3
_VMEM_LIMIT = 32 * 1024 * 1024        # safe scoped-VMEM cap on v5e/v6e/v7x
_RESIDENT_BUDGET = 8 * 1024 * 1024    # max bytes (x2 buffers) for resident P1/P2


def _round_up(x, m):
    return ((x + m - 1) // m) * m


# --------------------------------------------------------------------------
# Kernel 1: per-view FC encoders + concat-free projection  P1 = H_merge @ Wg1
# --------------------------------------------------------------------------
def encoder_kernel(x1_ref, x2_ref,
                   w11_ref, b11_ref, w12_ref, b12_ref,
                   w21_ref, b21_ref, w22_ref, b22_ref,
                   wg1a_ref, wg1b_ref,
                   p1_ref):
    cdt = w11_ref.dtype  # bf16 compute dtype at the MXU inputs

    def fcnet(x, w1, b1, w2, b2):
        h = jnp.maximum(jnp.dot(x, w1, preferred_element_type=jnp.float32) + b1, 0.0)
        h = jnp.maximum(jnp.dot(h.astype(cdt), w2,
                                preferred_element_type=jnp.float32) + b2, 0.0)
        return h.astype(cdt)

    h1 = fcnet(x1_ref[...], w11_ref[...], b11_ref[...], w12_ref[...], b12_ref[...])
    h2 = fcnet(x2_ref[...], w21_ref[...], b21_ref[...], w22_ref[...], b22_ref[...])
    # concat([h1, h2], 1) @ Wg1  ==  h1 @ Wg1[:F] + h2 @ Wg1[F:]  (no XLU shuffle)
    p1 = (jnp.dot(h1, wg1a_ref[...], preferred_element_type=jnp.float32) +
          jnp.dot(h2, wg1b_ref[...], preferred_element_type=jnp.float32))
    p1_ref[...] = p1.astype(p1_ref.dtype)


def _k_chunk(act_ref, adj_ref, k):
    """k-th reduction chunk of an activation that is either VMEM-resident
    (whole array) or delivered pre-sliced by its BlockSpec."""
    tk = adj_ref.shape[1]
    if act_ref.shape[0] == tk:          # per-k slice spec, or K == 1
        return act_ref[...]
    start = pl.multiple_of(k * tk, tk)  # whole-array resident: slice in VMEM
    return act_ref[pl.ds(start, tk), :]


# --------------------------------------------------------------------------
# Kernel 2: Z = dropout(relu(adj @ P1 + bg1));  P2 = Z @ Wg2
# --------------------------------------------------------------------------
def gc1_kernel(adj_ref, p1_ref, bg1_ref, mask_ref, wg2_ref, p2_ref, acc_ref):
    k = pl.program_id(1)

    @pl.when(k == 0)
    def _():
        acc_ref[...] = jnp.zeros_like(acc_ref)

    acc_ref[...] += jnp.dot(adj_ref[...], _k_chunk(p1_ref, adj_ref, k),
                            preferred_element_type=jnp.float32)

    @pl.when(k == pl.num_programs(1) - 1)
    def _():
        z = (jnp.maximum(acc_ref[...] + bg1_ref[...], 0.0)
             * mask_ref[...].astype(jnp.float32))
        p2_ref[...] = jnp.dot(z.astype(wg2_ref.dtype), wg2_ref[...],
                              preferred_element_type=jnp.float32).astype(p2_ref.dtype)


# --------------------------------------------------------------------------
# Kernel 3: out = adj @ P2 + bg2
# --------------------------------------------------------------------------
def gc2_kernel(adj_ref, p2_ref, bg2_ref, out_ref, acc_ref):
    k = pl.program_id(1)

    @pl.when(k == 0)
    def _():
        acc_ref[...] = jnp.zeros_like(acc_ref)

    acc_ref[...] += jnp.dot(adj_ref[...], _k_chunk(p2_ref, adj_ref, k),
                            preferred_element_type=jnp.float32)

    @pl.when(k == pl.num_programs(1) - 1)
    def _():
        out_ref[...] = (acc_ref[...] + bg2_ref[...]).astype(out_ref.dtype)


# --------------------------------------------------------------------------
# Wrapper
# --------------------------------------------------------------------------
def lgcn_forward(X, adj, params, dropout_key, *, p_drop=DROP_P, training=True):
    """X: list of two (N, d_i) arrays; adj: (N, N); params: dict of weights."""
    f32, bf16 = jnp.float32, jnp.bfloat16

    N = adj.shape[0]
    d1, d2 = X[0].shape[1], X[1].shape[1]
    h1_1 = params["w11"].shape[-1]
    h2_1 = params["w21"].shape[-1]
    dim_fc = params["w12"].shape[-1]
    G = params["bg1"].shape[-1]               # dim_GCN
    C = params["bg2"].shape[-1]               # num_class

    # lane-dense padded widths (all small contraction/output dims -> 128 lanes)
    d1p, d2p = _round_up(d1, 128), _round_up(d2, 128)
    h1p, h2p = _round_up(h1_1, 128), _round_up(h2_1, 128)
    Fp = _round_up(dim_fc, 128)
    Gp = _round_up(G, 128)
    Cp = _round_up(C, 128)

    # --- adj tile sizes: large enough to amortize ~0.35us/step, R kept >= 2 ---
    if N >= 8192:
        TM, TK = 512, 2048
    elif N >= 2048:
        TM, TK = 512, 1024
    elif N >= 1024:
        TM, TK = 512, 512
    elif N >= 512:
        TM, TK = 256, 512
    elif N >= 256:
        TM, TK = 256, 256
    else:
        TM = TK = _round_up(N, 8)
    Npad = _round_up(N, max(TM, TK))
    R, K = Npad // TM, Npad // TK

    def pad2(a, rows, cols, dtype):
        a = a.astype(dtype)                   # cast BEFORE pad (no f32 N^2 temp)
        return jnp.pad(a, ((0, rows - a.shape[0]), (0, cols - a.shape[1])))

    # --- padded / pre-cast operands ---
    # TODO(synk): if adj is static across training steps, hoist this pad+cast out.
    adj_p = pad2(adj, Npad, Npad, bf16)       # dominant HBM stream in bf16
    x1 = pad2(X[0], Npad, d1p, bf16)
    x2 = pad2(X[1], Npad, d2p, bf16)

    w11 = pad2(params["w11"], d1p, h1p, bf16); b11 = pad2(params["b11"], 1, h1p, f32)
    w12 = pad2(params["w12"], h1p, Fp, bf16);  b12 = pad2(params["b12"], 1, Fp, f32)
    w21 = pad2(params["w21"], d2p, h2p, bf16); b21 = pad2(params["b21"], 1, h2p, f32)
    w22 = pad2(params["w22"], h2p, Fp, bf16);  b22 = pad2(params["b22"], 1, Fp, f32)

    wg1a = pad2(params["wg1"][:dim_fc], Fp, Gp, bf16)   # concat-free split of Wg1
    wg1b = pad2(params["wg1"][dim_fc:], Fp, Gp, bf16)
    bg1 = pad2(params["bg1"], 1, Gp, f32)
    wg2 = pad2(params["wg2"], Gp, Cp, bf16)
    bg2 = pad2(params["bg2"], 1, Cp, f32)

    # Inverted-dropout keep mask (training=True default, like F.dropout), bf16
    # with the 1/(1-p) scale folded in -> half the HBM bytes of an f32 mask.
    if training:
        keep = jax.random.bernoulli(dropout_key, 1.0 - p_drop, (Npad, Gp))
        mask = (keep.astype(f32) * (1.0 / (1.0 - p_drop))).astype(bf16)
    else:
        mask = jnp.ones((Npad, Gp), bf16)

    full2 = lambda i: (0, 0)

    # ---- 1) encoder: P1 = H_merge @ Wg1  (bf16 output, row-tiled) ----
    p1 = pl.pallas_call(
        encoder_kernel,
        out_shape=jax.ShapeDtypeStruct((Npad, Gp), bf16),
        grid=(R,),
        in_specs=[
            pl.BlockSpec((TM, d1p), lambda i: (i, 0)),
            pl.BlockSpec((TM, d2p), lambda i: (i, 0)),
            pl.BlockSpec(w11.shape, full2),
            pl.BlockSpec(b11.shape, full2),
            pl.BlockSpec(w12.shape, full2),
            pl.BlockSpec(b12.shape, full2),
            pl.BlockSpec(w21.shape, full2),
            pl.BlockSpec(b21.shape, full2),
            pl.BlockSpec(w22.shape, full2),
            pl.BlockSpec(b22.shape, full2),
            pl.BlockSpec(wg1a.shape, full2),
            pl.BlockSpec(wg1b.shape, full2),
        ],
        out_specs=pl.BlockSpec((TM, Gp), lambda i: (i, 0)),
        compiler_params=pltpu.CompilerParams(
            dimension_semantics=("parallel",),
            vmem_limit_bytes=_VMEM_LIMIT),
    )(x1, x2, w11, b11, w12, b12, w21, b21, w22, b22, wg1a, wg1b)

    # ---- 2) gc1 + relu + dropout + projection by Wg2 ----
    # Keep the (Npad, Gp) activation fully VMEM-resident (DMA'd once) unless it
    # would blow the VMEM budget, in which case fall back to per-k slices.
    p1_resident = (2 * Npad * Gp * 2) <= _RESIDENT_BUDGET
    p1_spec = (pl.BlockSpec((Npad, Gp), lambda i, k: (0, 0)) if p1_resident
               else pl.BlockSpec((TK, Gp), lambda i, k: (k, 0)))
    p1_bytes = (Npad * Gp * 2) if p1_resident else (R * Npad * Gp * 2)

    p2 = pl.pallas_call(
        gc1_kernel,
        out_shape=jax.ShapeDtypeStruct((Npad, Cp), bf16),
        grid=(R, K),
        in_specs=[
            pl.BlockSpec((TM, TK), lambda i, k: (i, k)),   # adj tile (streamed)
            p1_spec,                                       # P1 (resident or k-slice)
            pl.BlockSpec((1, Gp), lambda i, k: (0, 0)),    # bg1
            pl.BlockSpec((TM, Gp), lambda i, k: (i, 0)),   # dropout mask row tile
            pl.BlockSpec((Gp, Cp), lambda i, k: (0, 0)),   # Wg2 (resident)
        ],
        out_specs=pl.BlockSpec((TM, Cp), lambda i, k: (i, 0)),
        scratch_shapes=[pltpu.VMEM((TM, Gp), jnp.float32)],
        compiler_params=pltpu.CompilerParams(
            dimension_semantics=("parallel", "arbitrary"),
            vmem_limit_bytes=_VMEM_LIMIT),
        cost_estimate=pl.CostEstimate(
            flops=2 * Npad * Npad * Gp + 2 * Npad * Gp * Cp,
            transcendentals=0,
            bytes_accessed=2 * Npad * Npad + p1_bytes
                           + 2 * Npad * Gp + 2 * Gp * Cp + 2 * Npad * Cp),
    )(adj_p, p1, bg1, mask, wg2)

    # ---- 3) gc2 ----
    p2_resident = (2 * Npad * Cp * 2) <= _RESIDENT_BUDGET
    p2_spec = (pl.BlockSpec((Npad, Cp), lambda i, k: (0, 0)) if p2_resident
               else pl.BlockSpec((TK, Cp), lambda i, k: (k, 0)))
    p2_bytes = (Npad * Cp * 2) if p2_resident else (R * Npad * Cp * 2)

    out = pl.pallas_call(
        gc2_kernel,
        out_shape=jax.ShapeDtypeStruct((Npad, Cp), jnp.float32),
        grid=(R, K),
        in_specs=[
            pl.BlockSpec((TM, TK), lambda i, k: (i, k)),   # adj tile (streamed)
            p2_spec,                                       # P2 (resident or k-slice)
            pl.BlockSpec((1, Cp), lambda i, k: (0, 0)),    # bg2
        ],
        out_specs=pl.BlockSpec((TM, Cp), lambda i, k: (i, 0)),
        scratch_shapes=[pltpu.VMEM((TM, Cp), jnp.float32)],
        compiler_params=pltpu.CompilerParams(
            dimension_semantics=("parallel", "arbitrary"),
            vmem_limit_bytes=_VMEM_LIMIT),
        cost_estimate=pl.CostEstimate(
            flops=2 * Npad * Npad * Cp,
            transcendentals=0,
            bytes_accessed=2 * Npad * Npad + p2_bytes + 4 * Npad * Cp),
    )(adj_p, p2, bg2)

    return out[:N, :C]


def make_params(key, d1, d2, dim_FCnet, dim_GCN, num_class):
    ks = jax.random.split(key, 16)
    f32 = jnp.float32

    def w(k, shape, scale=0.1):
        return (scale * jax.random.normal(k, shape)).astype(f32)

    h1_1, h1_2 = d1 // 2, d2 // 2
    return {
        # FCnet for view 0: d1 -> d1//2 -> dim_FCnet   (weights stored (in, out))
        "w11": w(ks[0], (d1, h1_1)), "b11": w(ks[1], (1, h1_1)),
        "w12": w(ks[2], (h1_1, dim_FCnet)), "b12": w(ks[3], (1, dim_FCnet)),
        # FCnet for view 1: d2 -> d2//2 -> dim_FCnet
        "w21": w(ks[4], (d2, h1_2)), "b21": w(ks[5], (1, h1_2)),
        "w22": w(ks[6], (h1_2, dim_FCnet)), "b22": w(ks[7], (1, dim_FCnet)),
        # gc1: (view_num * dim_FCnet) -> dim_GCN
        "wg1": w(ks[8], (2 * dim_FCnet, dim_GCN)), "bg1": w(ks[9], (1, dim_GCN)),
        # gc2: dim_GCN -> num_class
        "wg2": w(ks[10], (dim_GCN, num_class)), "bg2": w(ks[11], (1, num_class)),
    }


if __name__ == "__main__":
    # small shapes: N=16 nodes, 2 views with feature dims 16 and 8
    N, d1, d2 = 16, 16, 8
    dim_FCnet, dim_GCN, num_class = 8, 16, 4

    key = jax.random.PRNGKey(0)
    k_x1, k_x2, k_adj, k_p, k_drop = jax.random.split(key, 5)

    X = [jax.random.normal(k_x1, (N, d1), dtype=jnp.float32),
         jax.random.normal(k_x2, (N, d2), dtype=jnp.float32)]

    # symmetric, row-normalized-ish adjacency with self loops
    a = jax.random.uniform(k_adj, (N, N), dtype=jnp.float32)
    a = (a + a.T) * 0.5 + jnp.eye(N, dtype=jnp.float32)
    adj = a / jnp.sum(a, axis=1, keepdims=True)

    params = make_params(k_p, d1, d2, dim_FCnet, dim_GCN, num_class)

    out = lgcn_forward(X, adj, params, k_drop)
    jax.block_until_ready(out)
    assert out.shape == (N, num_class) and out.dtype == jnp.float32
    print("KERNEL_OK")
</pallas_src>

<mosaic_0001>
module attributes {stable_mosaic.version = 11 : i64} {
  func.func @encoder_kernel(%arg0: i32, %arg1: memref<16x128xbf16, #tpu.memory_space<vmem>>, %arg2: memref<16x128xbf16, #tpu.memory_space<vmem>>, %arg3: memref<128x128xbf16, #tpu.memory_space<vmem>>, %arg4: memref<1x128xf32, #tpu.memory_space<vmem>>, %arg5: memref<128x128xbf16, #tpu.memory_space<vmem>>, %arg6: memref<1x128xf32, #tpu.memory_space<vmem>>, %arg7: memref<128x128xbf16, #tpu.memory_space<vmem>>, %arg8: memref<1x128xf32, #tpu.memory_space<vmem>>, %arg9: memref<128x128xbf16, #tpu.memory_space<vmem>>, %arg10: memref<1x128xf32, #tpu.memory_space<vmem>>, %arg11: memref<128x128xbf16, #tpu.memory_space<vmem>>, %arg12: memref<128x128xbf16, #tpu.memory_space<vmem>>, %arg13: memref<16x128xbf16, #tpu.memory_space<vmem>>) attributes {dimension_semantics = [#tpu.dimension_semantics<parallel>], iteration_bounds = array<i64: 1>, scalar_prefetch = 0 : i64, scratch_operands = 0 : i64, tpu.core_type = #tpu.core_type<tc>, window_params = [{transform_indices = @transform_0, window_bounds = array<i64: 16, 128>}, {transform_indices = @transform_1, window_bounds = array<i64: 16, 128>}, {pipeline_mode = #tpu.pipeline_mode<synchronous>, transform_indices = @transform_2, window_bounds = array<i64: 128, 128>}, {pipeline_mode = #tpu.pipeline_mode<synchronous>, transform_indices = @transform_3, window_bounds = array<i64: 1, 128>}, {pipeline_mode = #tpu.pipeline_mode<synchronous>, transform_indices = @transform_4, window_bounds = array<i64: 128, 128>}, {pipeline_mode = #tpu.pipeline_mode<synchronous>, transform_indices = @transform_5, window_bounds = array<i64: 1, 128>}, {pipeline_mode = #tpu.pipeline_mode<synchronous>, transform_indices = @transform_6, window_bounds = array<i64: 128, 128>}, {pipeline_mode = #tpu.pipeline_mode<synchronous>, transform_indices = @transform_7, window_bounds = array<i64: 1, 128>}, {pipeline_mode = #tpu.pipeline_mode<synchronous>, transform_indices = @transform_8, window_bounds = array<i64: 128, 128>}, {pipeline_mode = #tpu.pipeline_mode<synchronous>, transform_indices = @transform_9, window_bounds = array<i64: 1, 128>}, {pipeline_mode = #tpu.pipeline_mode<synchronous>, transform_indices = @transform_10, window_bounds = array<i64: 128, 128>}, {pipeline_mode = #tpu.pipeline_mode<synchronous>, transform_indices = @transform_11, window_bounds = array<i64: 128, 128>}, {transform_indices = @transform_12, window_bounds = array<i64: 16, 128>}]} {
    %c0 = arith.constant 0 : index
    %c0_0 = arith.constant 0 : index
    %0 = vector.load %arg1[%c0, %c0_0] : memref<16x128xbf16, #tpu.memory_space<vmem>>, vector<16x128xbf16>
    %c0_1 = arith.constant 0 : index
    %c0_2 = arith.constant 0 : index
    %1 = vector.load %arg3[%c0_1, %c0_2] : memref<128x128xbf16, #tpu.memory_space<vmem>>, vector<128x128xbf16>
    %c0_3 = arith.constant 0 : index
    %c0_4 = arith.constant 0 : index
    %2 = vector.load %arg4[%c0_3, %c0_4] : memref<1x128xf32, #tpu.memory_space<vmem>>, vector<1x128xf32>
    %c0_5 = arith.constant 0 : index
    %c0_6 = arith.constant 0 : index
    %3 = vector.load %arg5[%c0_5, %c0_6] : memref<128x128xbf16, #tpu.memory_space<vmem>>, vector<128x128xbf16>
    %c0_7 = arith.constant 0 : index
    %c0_8 = arith.constant 0 : index
    %4 = vector.load %arg6[%c0_7, %c0_8] : memref<1x128xf32, #tpu.memory_space<vmem>>, vector<1x128xf32>
    %cst = arith.constant dense<0.000000e+00> : vector<16x128xf32>
    %5 = tpu.matmul %0, %1, %cst {dimension_numbers = #tpu.dot_dimension_numbers<[1], [0], [0], [1], [0, 0, 1, 1], [], []>} : vector<16x128xbf16>, vector<128x128xbf16>, vector<16x128xf32> -> vector<16x128xf32>
    %6 = vector.broadcast %2 : vector<1x128xf32> to vector<16x128xf32>
    %7 = arith.addf %5, %6 : vector<16x128xf32>
    %cst_9 = arith.constant 0.000000e+00 : f32
    %8 = vector.broadcast %cst_9 : f32 to vector<16x128xf32>
    %9 = arith.maximumf %7, %8 : vector<16x128xf32>
    %10 = arith.truncf %9 : vector<16x128xf32> to vector<16x128xbf16>
    %cst_10 = arith.constant dense<0.000000e+00> : vector<16x128xf32>
    %11 = tpu.matmul %10, %3, %cst_10 {dimension_numbers = #tpu.dot_dimension_numbers<[1], [0], [0], [1], [0, 0, 1, 1], [], []>} : vector<16x128xbf16>, vector<128x128xbf16>, vector<16x128xf32> -> vector<16x128xf32>
    %12 = vector.broadcast %4 : vector<1x128xf32> to vector<16x128xf32>
    %13 = arith.addf %11, %12 : vector<16x128xf32>
    %cst_11 = arith.constant 0.000000e+00 : f32
    %14 = vector.broadcast %cst_11 : f32 to vector<16x128xf32>
    %15 = arith.maximumf %13, %14 : vector<16x128xf32>
    %16 = arith.truncf %15 : vector<16x128xf32> to vector<16x128xbf16>
    %c0_12 = arith.constant 0 : index
    %c0_13 = arith.constant 0 : index
    %17 = vector.load %arg2[%c0_12, %c0_13] : memref<16x128xbf16, #tpu.memory_space<vmem>>, vector<16x128xbf16>
    %c0_14 = arith.constant 0 : index
    %c0_15 = arith.constant 0 : index
    %18 = vector.load %arg7[%c0_14, %c0_15] : memref<128x128xbf16, #tpu.memory_space<vmem>>, vector<128x128xbf16>
    %c0_16 = arith.constant 0 : index
    %c0_17 = arith.constant 0 : index
    %19 = vector.load %arg8[%c0_16, %c0_17] : memref<1x128xf32, #tpu.memory_space<vmem>>, vector<1x128xf32>
    %c0_18 = arith.constant 0 : index
    %c0_19 = arith.constant 0 : index
    %20 = vector.load %arg9[%c0_18, %c0_19] : memref<128x128xbf16, #tpu.memory_space<vmem>>, vector<128x128xbf16>
    %c0_20 = arith.constant 0 : index
    %c0_21 = arith.constant 0 : index
    %21 = vector.load %arg10[%c0_20, %c0_21] : memref<1x128xf32, #tpu.memory_space<vmem>>, vector<1x128xf32>
    %cst_22 = arith.constant dense<0.000000e+00> : vector<16x128xf32>
    %22 = tpu.matmul %17, %18, %cst_22 {dimension_numbers = #tpu.dot_dimension_numbers<[1], [0], [0], [1], [0, 0, 1, 1], [], []>} : vector<16x128xbf16>, vector<128x128xbf16>, vector<16x128xf32> -> vector<16x128xf32>
    %23 = vector.broadcast %19 : vector<1x128xf32> to vector<16x128xf32>
    %24 = arith.addf %22, %23 : vector<16x128xf32>
    %cst_23 = arith.constant 0.000000e+00 : f32
    %25 = vector.broadcast %cst_23 : f32 to vector<16x128xf32>
    %26 = arith.maximumf %24, %25 : vector<16x128xf32>
    %27 = arith.truncf %26 : vector<16x128xf32> to vector<16x128xbf16>
    %cst_24 = arith.constant dense<0.000000e+00> : vector<16x128xf32>
    %28 = tpu.matmul %27, %20, %cst_24 {dimension_numbers = #tpu.dot_dimension_numbers<[1], [0], [0], [1], [0, 0, 1, 1], [], []>} : vector<16x128xbf16>, vector<128x128xbf16>, vector<16x128xf32> -> vector<16x128xf32>
    %29 = vector.broadcast %21 : vector<1x128xf32> to vector<16x128xf32>
    %30 = arith.addf %28, %29 : vector<16x128xf32>
    %cst_25 = arith.constant 0.000000e+00 : f32
    %31 = vector.broadcast %cst_25 : f32 to vector<16x128xf32>
    %32 = arith.maximumf %30, %31 : vector<16x128xf32>
    %33 = arith.truncf %32 : vector<16x128xf32> to vector<16x128xbf16>
    %c0_26 = arith.constant 0 : index
    %c0_27 = arith.constant 0 : index
    %34 = vector.load %arg11[%c0_26, %c0_27] : memref<128x128xbf16, #tpu.memory_space<vmem>>, vector<128x128xbf16>
    %cst_28 = arith.constant dense<0.000000e+00> : vector<16x128xf32>
    %35 = tpu.matmul %16, %34, %cst_28 {dimension_numbers = #tpu.dot_dimension_numbers<[1], [0], [0], [1], [0, 0, 1, 1], [], []>} : vector<16x128xbf16>, vector<128x128xbf16>, vector<16x128xf32> -> vector<16x128xf32>
    %c0_29 = arith.constant 0 : index
    %c0_30 = arith.constant 0 : index
    %36 = vector.load %arg12[%c0_29, %c0_30] : memref<128x128xbf16, #tpu.memory_space<vmem>>, vector<128x128xbf16>
    %cst_31 = arith.constant dense<0.000000e+00> : vector<16x128xf32>
    %37 = tpu.matmul %33, %36, %cst_31 {dimension_numbers = #tpu.dot_dimension_numbers<[1], [0], [0], [1], [0, 0, 1, 1], [], []>} : vector<16x128xbf16>, vector<128x128xbf16>, vector<16x128xf32> -> vector<16x128xf32>
    %38 = arith.addf %35, %37 : vector<16x128xf32>
    %39 = arith.truncf %38 : vector<16x128xf32> to vector<16x128xbf16>
    %c0_32 = arith.constant 0 : index
    %c0_33 = arith.constant 0 : index
    %40 = vector.load %arg13[%c0_32, %c0_33] : memref<16x128xbf16, #tpu.memory_space<vmem>>, vector<16x128xbf16>
    tpu.vector_store %arg13[%c0_32, %c0_33], %39 {strides = array<i32>} : memref<16x128xbf16, #tpu.memory_space<vmem>>, vector<16x128xbf16>,
    return
  }
  func.func @transform_0(%arg0: i32) -> (i32, i32) {
    %c0_i32 = arith.constant 0 : i32
    %c0_i32_0 = arith.constant 0 : i32
    return %arg0, %c0_i32 : i32, i32
  }
  func.func @transform_1(%arg0: i32) -> (i32, i32) {
    %c0_i32 = arith.constant 0 : i32
    %c0_i32_0 = arith.constant 0 : i32
    return %arg0, %c0_i32 : i32, i32
  }
  func.func @transform_2(%arg0: i32) -> (i32, i32) {
    %c0_i32 = arith.constant 0 : i32
    %c0_i32_0 = arith.constant 0 : i32
    %c0_i32_1 = arith.constant 0 : i32
    return %c0_i32, %c0_i32_0 : i32, i32
  }
  func.func @transform_3(%arg0: i32) -> (i32, i32) {
    %c0_i32 = arith.constant 0 : i32
    %c0_i32_0 = arith.constant 0 : i32
    %c0_i32_1 = arith.constant 0 : i32
    return %c0_i32, %c0_i32_0 : i32, i32
  }
  func.func @transform_4(%arg0: i32) -> (i32, i32) {
    %c0_i32 = arith.constant 0 : i32
    %c0_i32_0 = arith.constant 0 : i32
    %c0_i32_1 = arith.constant 0 : i32
    return %c0_i32, %c0_i32_0 : i32, i32
  }
  func.func @transform_5(%arg0: i32) -> (i32, i32) {
    %c0_i32 = arith.constant 0 : i32
    %c0_i32_0 = arith.constant 0 : i32
    %c0_i32_1 = arith.constant 0 : i32
    return %c0_i32, %c0_i32_0 : i32, i32
  }
  func.func @transform_6(%arg0: i32) -> (i32, i32) {
    %c0_i32 = arith.constant 0 : i32
    %c0_i32_0 = arith.constant 0 : i32
    %c0_i32_1 = arith.constant 0 : i32
    return %c0_i32, %c0_i32_0 : i32, i32
  }
  func.func @transform_7(%arg0: i32) -> (i32, i32) {
    %c0_i32 = arith.constant 0 : i32
    %c0_i32_0 = arith.constant 0 : i32
    %c0_i32_1 = arith.constant 0 : i32
    return %c0_i32, %c0_i32_0 : i32, i32
  }
  func.func @transform_8(%arg0: i32) -> (i32, i32) {
    %c0_i32 = arith.constant 0 : i32
    %c0_i32_0 = arith.constant 0 : i32
    %c0_i32_1 = arith.constant 0 : i32
    return %c0_i32, %c0_i32_0 : i32, i32
  }
  func.func @transform_9(%arg0: i32) -> (i32, i32) {
    %c0_i32 = arith.constant 0 : i32
    %c0_i32_0 = arith.constant 0 : i32
    %c0_i32_1 = arith.constant 0 : i32
    return %c0_i32, %c0_i32_0 : i32, i32
  }
  func.func @transform_10(%arg0: i32) -> (i32, i32) {
    %c0_i32 = arith.constant 0 : i32
    %c0_i32_0 = arith.constant 0 : i32
    %c0_i32_1 = arith.constant 0 : i32
    return %c0_i32, %c0_i32_0 : i32, i32
  }
  func.func @transform_11(%arg0: i32) -> (i32, i32) {
    %c0_i32 = arith.constant 0 : i32
    %c0_i32_0 = arith.constant 0 : i32
    %c0_i32_1 = arith.constant 0 : i32
    return %c0_i32, %c0_i32_0 : i32, i32
  }
  func.func @transform_12(%arg0: i32) -> (i32, i32) {
    %c0_i32 = arith.constant 0 : i32
    %c0_i32_0 = arith.constant 0 : i32
    return %arg0, %c0_i32 : i32, i32
  }
}

</mosaic_0001>

<bundles_post_ra>
// kernel: tpu_custom_call.1
= control target key start
LH: loop header
LB: loop body
LE: loop exit
PB: predicated region body
PF: predicated region fallthrough
CT: control target
= control target key end

     0   :  { %17 = vsyncpa [#allocation3], 0  ;;  %s1565_s0 = inlined_call_operand.hbm [shape: bf16[16,128], index: 0, kind: input, shape index: {}]   ;;  %s1566_s1 = inlined_call_operand.hbm [shape: bf16[16,128], index: 1, kind: input, shape index: {}]   ;;  %s1567_s2 = inlined_call_operand.hbm [shape: bf16[128,128], index: 2, kind: input, shape index: {}]   ;;  %s1568_s3 = inlined_call_operand.vmem [shape: f32[1,128], index: 3, kind: input, shape index: {}]   ;;  %s1569_s4 = inlined_call_operand.hbm [shape: bf16[128,128], index: 4, kind: input, shape index: {}]   ;;  %s1570_s5 = inlined_call_operand.vmem [shape: f32[1,128], index: 5, kind: input, shape index: {}]   ;;  %s1571_s6 = inlined_call_operand.hbm [shape: bf16[128,128], index: 6, kind: input, shape index: {}]   ;;  %s1572_s7 = inlined_call_operand.vmem [shape: f32[1,128], index: 7, kind: input, shape index: {}]   ;;  %s1573_s8 = inlined_call_operand.hbm [shape: bf16[128,128], index: 8, kind: input, shape index: {}]   ;;  %s1574_s9 = inlined_call_operand.vmem [shape: f32[1,128], index: 9, kind: input, shape index: {}]   ;;  %s1575_s10 = inlined_call_operand.hbm [shape: bf16[128,128], index: 10, kind: input, shape index: {}]   ;;  %s1576_s11 = inlined_call_operand.hbm [shape: bf16[128,128], index: 11, kind: input, shape index: {}]   ;;  %s1577_s12 = inlined_call_operand.hbm [shape: bf16[16,128], index: 12, kind: output, shape index: {}]  }
   0x1   :  { %18 = vsyncpa [#allocation6], 0 }
   0x2   :  { %19 = vsyncpa [#allocation9], 0 }
   0x3   :  { %20 = vsyncpa [#allocation12], 0 }
   0x4   :  { %21 = vsyncpa [#allocation15], 0 }
   0x5   :  { %22 = vsyncpa [#allocation4], 0  ;;  %s1361_s21 = smov [#allocation5]   ;;  %s1362_s23 = smov [#allocation8]  }
   0x6   :  { %s40_s22 = sshll.u32 %s1361_s21, 4  ;;  %s66_s24 = sshll.u32 %s1362_s23, 4  ;;  %s41_s22 = int_to_ptr.vmem [resolvable:$true] %s40_s22  ;;  %s67_s24 = int_to_ptr.vmem [resolvable:$true] %s66_s24 }
   0x7   :  { %s1177_s25 = scalar_lea.vmem %s41_s22, 128  ;;  %p1182_p1 = scmp.lt.s32.totalorder %s41_s22, %s41_s22 }
   0x8   :  { %p1178_p0 = scmp.ne.s32.totalorder %s41_s22, %s1177_s25  ;;  %p1183_p2 = scmp.lt.s32.totalorder %s1177_s25, %s1177_s25 }
   0xa   :  { %p1184_p3 = por %p1183_p2, %p1182_p1 }
   0xc   :  { %p1185_p4 = pnand %p1184_p3, %p1178_p0 }
   0xe   :  { %1188 = shalt.err (!%p1185_p4)
}
   0xf   :  { %s1363_s26 = smov 64   ;;  %s1364_s27 = smov 4  }
  0x10   :  { %46 = dma.hbm_to_vmem [thread:$0]  %s1566_s1, 128, %s41_s22, [#allocation6], %s1363_s26, %s1363_s26, %s1364_s27  }
  0x11   :  { %s1197_s30 = scalar_lea.vmem %s67_s24, 1024  ;;  %p1202_p6 = scmp.lt.s32.totalorder %s67_s24, %s67_s24 }
  0x12   :  { %p1198_p5 = scmp.ne.s32.totalorder %s67_s24, %s1197_s30  ;;  %p1203_p7 = scmp.lt.s32.totalorder %s1197_s30, %s1197_s30 }
  0x14   :  { %p1204_p8 = por %p1203_p7, %p1202_p6 }
  0x16   :  { %p1205_p9 = pnand %p1204_p8, %p1198_p5 }
  0x18   :  { %1208 = shalt.err (!%p1205_p9)
}
  0x19   :  { %72 = dma.hbm_to_vmem [thread:$0]  %s1569_s4, 1024, %s67_s24, [#allocation9], %s1363_s26, %s1363_s26, %s1364_s27  }
  0x1a   :  { %s1365_s15 = smov [#allocation11]   ;;  %s1366_s17 = smov [#allocation2]  }
  0x1b   :  { %s94_s16 = sshll.u32 %s1365_s15, 4  ;;  %s28_s18 = sshll.u32 %s1366_s17, 4  ;;  %s95_s16 = int_to_ptr.vmem [resolvable:$true] %s94_s16  ;;  %s29_s18 = int_to_ptr.vmem [resolvable:$true] %s28_s18 }
  0x1c   :  { %s1217_s1 = scalar_lea.vmem %s95_s16, 1024  ;;  %p1222_p11 = scmp.lt.s32.totalorder %s95_s16, %s95_s16 }
  0x1d   :  { %p1218_p10 = scmp.ne.s32.totalorder %s95_s16, %s1217_s1  ;;  %p1223_p12 = scmp.lt.s32.totalorder %s1217_s1, %s1217_s1 }
  0x1f   :  { %p1224_p13 = por %p1223_p12, %p1222_p11 }
  0x21   :  { %p1225_p0 = pnand %p1224_p13, %p1218_p10 }
  0x23   :  { %1228 = shalt.err (!%p1225_p0)
}
  0x24   :  { %100 = dma.hbm_to_vmem [thread:$0]  %s1573_s8, 1024, %s95_s16, [#allocation12], %s1363_s26, %s1363_s26, %s1364_s27  }
  0x25   :  { %s1237_s4 = scalar_lea.vmem %s29_s18, 128  ;;  %p1242_p2 = scmp.lt.s32.totalorder %s29_s18, %s29_s18 }
  0x26   :  { %p1238_p1 = scmp.ne.s32.totalorder %s29_s18, %s1237_s4  ;;  %p1243_p3 = scmp.lt.s32.totalorder %s1237_s4, %s1237_s4 }
  0x28   :  { %p1244_p4 = por %p1243_p3, %p1242_p2 }
  0x2a   :  { %p1245_p5 = pnand %p1244_p4, %p1238_p1 }
  0x2c   :  { %1248 = shalt.err (!%p1245_p5)
}
  0x2d   :  { %34 = dma.hbm_to_vmem [thread:$0]  %s1565_s0, 128, %s29_s18, [#allocation3], %s1363_s26, %s1363_s26, %s1364_s27  }
  0x2e   :  { %s1367_s23 = smov [#allocation7]   ;;  %s1368_s25 = smov [#allocation10]  }
  0x2f   :  { %s52_s24 = sshll.u32 %s1367_s23, 4  ;;  %s80_s28 = sshll.u32 %s1368_s25, 4  ;;  %s53_s24 = int_to_ptr.vmem [resolvable:$true] %s52_s24  ;;  %s81_s28 = int_to_ptr.vmem [resolvable:$true] %s80_s28 }
  0x30   :  { %s1257_s8 = scalar_lea.vmem %s53_s24, 1024  ;;  %p1262_p7 = scmp.lt.s32.totalorder %s53_s24, %s53_s24 }
  0x31   :  { %p1258_p6 = scmp.ne.s32.totalorder %s53_s24, %s1257_s8  ;;  %p1263_p8 = scmp.lt.s32.totalorder %s1257_s8, %s1257_s8 }
  0x33   :  { %p1264_p9 = por %p1263_p8, %p1262_p7 }
  0x35   :  { %p1265_p10 = pnand %p1264_p9, %p1258_p6 }
  0x37   :  { %1268 = shalt.err (!%p1265_p10)
}
  0x38   :  { %58 = dma.hbm_to_vmem [thread:$0]  %s1567_s2, 1024, %s53_s24, [#allocation6], %s1363_s26, %s1363_s26, %s1364_s27  }
  0x39   :  { %s1277_s0 = scalar_lea.vmem %s81_s28, 1024  ;;  %p1282_p12 = scmp.lt.s32.totalorder %s81_s28, %s81_s28 }
  0x3a   :  { %p1278_p11 = scmp.ne.s32.totalorder %s81_s28, %s1277_s0  ;;  %p1283_p13 = scmp.lt.s32.totalorder %s1277_s0, %s1277_s0 }
  0x3c   :  { %p1284_p0 = por %p1283_p13, %p1282_p12 }
  0x3e   :  { %p1285_p1 = pnand %p1284_p0, %p1278_p11 }
  0x40   :  { %1288 = shalt.err (!%p1285_p1)
}
  0x41   :  { %86 = dma.hbm_to_vmem [thread:$0]  %s1571_s6, 1024, %s81_s28, [#allocation9], %s1363_s26, %s1363_s26, %s1364_s27  }
  0x42   :  { %s1369_s15 = smov [#allocation13]   ;;  %s1370_s17 = smov [#allocation14]  }
  0x43   :  { %s108_s16 = sshll.u32 %s1369_s15, 4  ;;  %s120_s18 = sshll.u32 %s1370_s17, 4  ;;  %s109_s16 = int_to_ptr.vmem [resolvable:$true] %s108_s16  ;;  %s121_s18 = int_to_ptr.vmem [resolvable:$true] %s120_s18 }
  0x44   :  { %s1297_s2 = scalar_lea.vmem %s109_s16, 1024  ;;  %p1302_p3 = scmp.lt.s32.totalorder %s109_s16, %s109_s16 }
  0x45   :  { %p1298_p2 = scmp.ne.s32.totalorder %s109_s16, %s1297_s2  ;;  %p1303_p4 = scmp.lt.s32.totalorder %s1297_s2, %s1297_s2 }
  0x47   :  { %p1304_p5 = por %p1303_p4, %p1302_p3 }
  0x49   :  { %p1305_p6 = pnand %p1304_p5, %p1298_p2 }
  0x4b   :  { %1308 = shalt.err (!%p1305_p6)
}
  0x4c   :  { %114 = dma.hbm_to_vmem [thread:$0]  %s1575_s10, 1024, %s109_s16, [#allocation12], %s1363_s26, %s1363_s26, %s1364_s27  }
  0x4d   :  { %s1317_s6 = scalar_lea.vmem %s121_s18, 1024  ;;  %p1322_p8 = scmp.lt.s32.totalorder %s121_s18, %s121_s18 }
  0x4e   :  { %p1318_p7 = scmp.ne.s32.totalorder %s121_s18, %s1317_s6  ;;  %p1323_p9 = scmp.lt.s32.totalorder %s1317_s6, %s1317_s6 }
  0x50   :  { %p1324_p10 = por %p1323_p9, %p1322_p8 }
  0x52   :  { %p1325_p11 = pnand %p1324_p10, %p1318_p7 }
  0x54   :  { %1328 = shalt.err (!%p1325_p11)
}
  0x55   :  { %126 = dma.hbm_to_vmem [thread:$0]  %s1576_s11, 1024, %s121_s18, [#allocation15], %s1363_s26, %s1363_s26, %s1364_s27  }
  0x56   :  { %1349 = dma.done.wait [#allocation3], 128  }
  0x57   :  { %1350 = vsyncadd [#allocation3], 4294967168 }
  0x58   :  { %1351 = dma.done.wait [#allocation6], 1152  }
  0x59   :  { %1352 = vsyncadd [#allocation6], 4294966144 }
  0x5a   :  { %1353 = dma.done.wait [#allocation9], 2048  }
  0x5b   :  { %1354 = vsyncadd [#allocation9], 4294965248 }
  0x5c   :  { %1355 = dma.done.wait [#allocation12], 2048  }
  0x5d   :  { %1356 = vsyncadd [#allocation12], 4294965248 }
  0x5e   :  { %1357 = dma.done.wait [#allocation15], 1024  }
  0x5f   :  { %1358 = vsyncadd [#allocation15], 4294966272  ;;  %v1371_v0 = vmov 0.0   ;;  %vm1372_vm0 = vmmov 0   ;;  %v1119_v1 = vld [vmem:[#allocation7 + $0x38] sm:$0xff]   ;;  %v1120_v2 = vld [vmem:[#allocation7 + $0x30] sm:$0xff]  }
  0x60   :  { %986 = vmatprep.subr.bf16.mxu0 %v1371_v0  ;;  %1002 = vmatprep.mubr.msk.bf16.mxu0 %vm1372_vm0, %v1371_v0  ;;  %v1121_v3 = vld [vmem:[#allocation7 + $0x28] sm:$0xff]   ;;  %v1122_v4 = vld [vmem:[#allocation7 + $0x20] sm:$0xff]   ;;  %v1123_v5 = vld [vmem:[#allocation7 + $0x18] sm:$0xff]  }
  0x61   :  { %1006 = vmatprep.subr.bf16.mxu1 %v1371_v0  ;;  %1022 = vmatprep.mubr.msk.bf16.mxu1 %vm1372_vm0, %v1371_v0  ;;  %v1124_v6 = vld [vmem:[#allocation7 + $0x10] sm:$0xff]   ;;  %v1137_v7 = vld [vmem:[#allocation8 + $0x38] sm:$0xff]   ;;  %v1125_v9 = vld [vmem:[#allocation7 + $0x8] sm:$0xff]  }
  0x62   :  { %987 = vmatpush3.bf16.msra.mxu0 %v1119_v1  ;;  %1007 = vmatpush3.bf16.msra.mxu1 %v1137_v7  ;;  %v1138_v8 = vld [vmem:[#allocation8 + $0x30] sm:$0xff]   ;;  %v1139_v10 = vld [vmem:[#allocation8 + $0x28] sm:$0xff]   ;;  %v1126_v11 = vld [vmem:[#allocation7] sm:$0xff]  }
  0x63   :  { %988 = vmatprep.subr.bf16.mxu0 %v1371_v0  ;;  %1008 = vmatprep.subr.bf16.mxu1 %v1371_v0  ;;  %v1140_v12 = vld [vmem:[#allocation8 + $0x20] sm:$0xff]   ;;  %v1127_v13 = vld [vmem:[#allocation2] sm:$0xff]   ;;  %v1128_v14 = vld [vmem:[#allocation10 + $0x38] sm:$0xff]  }
  0x64   :  { %v1141_v15 = vld [vmem:[#allocation8 + $0x18] sm:$0xff]   ;;  %v1129_v16 = vld [vmem:[#allocation10 + $0x30] sm:$0xff]   ;;  %v1130_v17 = vld [vmem:[#allocation10 + $0x28] sm:$0xff]  }
  0x65   :  { %v1131_v18 = vld [vmem:[#allocation10 + $0x20] sm:$0xff]   ;;  %v1132_v19 = vld [vmem:[#allocation10 + $0x18] sm:$0xff]   ;;  %v1133_v20 = vld [vmem:[#allocation10 + $0x10] sm:$0xff]  }
  0x66   :  { %989 = vmatpush3.bf16.msra.mxu0 %v1120_v2  ;;  %1009 = vmatpush3.bf16.msra.mxu1 %v1138_v8  ;;  %v1134_v21 = vld [vmem:[#allocation10 + $0x8] sm:$0xff]   ;;  %v1135_v22 = vld [vmem:[#allocation10] sm:$0xff]   ;;  %v1136_v23 = vld [vmem:[#allocation5] sm:$0xff]  }
  0x67   :  { %990 = vmatprep.subr.bf16.mxu0 %v1371_v0  ;;  %1010 = vmatprep.subr.bf16.mxu1 %v1371_v0  ;;  %v1142_v24 = vld [vmem:[#allocation8 + $0x10] sm:$0xff]   ;;  %v1143_v25 = vld [vmem:[#allocation8 + $0x8] sm:$0xff]   ;;  %v1144_v26 = vld [vmem:[#allocation8] sm:$0xff]  }
  0x68   :  { %v869_v27 = vld [vmem:[%s1568_s3] ss:$0 sm:$0xff]  ;;  %v1145_v36 = vld [vmem:[#allocation11 + $0x38] sm:$0xff]   ;;  %v1147_v39 = vld [vmem:[#allocation11 + $0x28] sm:$0xff]  }
  0x69   :  { %v1146_v38 = vld [vmem:[#allocation11 + $0x30] sm:$0xff]   ;;  %v1148_v40 = vld [vmem:[#allocation11 + $0x20] sm:$0xff]   ;;  %v1149_v41 = vld [vmem:[#allocation11 + $0x18] sm:$0xff]  }
  0x6a   :  { %991 = vmatpush3.bf16.msra.mxu0 %v1121_v3  ;;  %1011 = vmatpush3.bf16.msra.mxu1 %v1139_v10  ;;  %v1150_v42 = vld [vmem:[#allocation11 + $0x10] sm:$0xff]   ;;  %v1151_v45 = vld [vmem:[#allocation11 + $0x8] sm:$0xff]   ;;  %v1152_v49 = vld [vmem:[#allocation11] sm:$0xff]  }
  0x6b   :  { %992 = vmatprep.subr.bf16.mxu0 %v1371_v0  ;;  %1012 = vmatprep.subr.bf16.mxu1 %v1371_v0  ;;  %v888_v43 = vld [vmem:[%s1572_s7] ss:$0 sm:$0xff]  ;;  %v1153_v54 = vld [vmem:[#allocation13 + $0x38] sm:$0xff]   ;;  %v1155_v57 = vld [vmem:[#allocation13 + $0x28] sm:$0xff]  }
  0x6c   :  { %v1154_v56 = vld [vmem:[#allocation13 + $0x30] sm:$0xff]   ;;  %v1156_v58 = vld [vmem:[#allocation13 + $0x20] sm:$0xff]   ;;  %v1157_v59 = vld [vmem:[#allocation13 + $0x18] sm:$0xff]  }
  0x6d   :  { %v1158_v60 = vld [vmem:[#allocation13 + $0x10] sm:$0xff]   ;;  %v1159_v61 = vld [vmem:[#allocation13 + $0x8] sm:$0xff]   ;;  %v1160_v62 = vld [vmem:[#allocation13] sm:$0xff]  }
  0x6e   :  { %993 = vmatpush3.bf16.msra.mxu0 %v1122_v4  ;;  %1013 = vmatpush3.bf16.msra.mxu1 %v1140_v12  ;;  %v1161_v63 = vld [vmem:[#allocation14 + $0x38] sm:$0xff]   ;;  %v1162_v1 = vld [vmem:[#allocation14 + $0x30] sm:$0xff]   ;;  %v1163_v2 = vld [vmem:[#allocation14 + $0x28] sm:$0xff]  }
  0x6f   :  { %994 = vmatprep.subr.bf16.mxu0 %v1371_v0  ;;  %1014 = vmatprep.subr.bf16.mxu1 %v1371_v0  ;;  %v1164_v3 = vld [vmem:[#allocation14 + $0x20] sm:$0xff]   ;;  %v1165_v4 = vld [vmem:[#allocation14 + $0x18] sm:$0xff]   ;;  %v879_v8 = vld [vmem:[%s1570_s5] ss:$0 sm:$0xff]  ;;  %s1373_s5 = smov [#allocation16]  }
  0x70   :  { %v1168_v7 = vld [vmem:[#allocation14] sm:$0xff]   ;;  %s853_s25 = sshll.u32 %s1373_s5, 4  ;;  %s854_s25 = int_to_ptr.vmem [resolvable:$true] %s853_s25 }
  0x71   :  { %p1334_p13 = scmp.lt.s32.totalorder %s854_s25, %s854_s25 }
  0x72   :  { %995 = vmatpush3.bf16.msra.mxu0 %v1123_v5  ;;  %1015 = vmatpush3.bf16.msra.mxu1 %v1141_v15  ;;  %v1166_v5 = vld [vmem:[#allocation14 + $0x10] sm:$0xff]  }
  0x73   :  { %996 = vmatprep.subr.bf16.mxu0 %v1371_v0  ;;  %1016 = vmatprep.subr.bf16.mxu1 %v1371_v0 }
  0x76   :  { %997 = vmatpush3.bf16.msra.mxu0 %v1124_v6  ;;  %1017 = vmatpush3.bf16.msra.mxu1 %v1142_v24  ;;  %v1167_v6 = vld [vmem:[#allocation14 + $0x8] sm:$0xff]  }
  0x77   :  { %998 = vmatprep.subr.bf16.mxu0 %v1371_v0  ;;  %1018 = vmatprep.subr.bf16.mxu1 %v1371_v0 }
  0x7a   :  { %999 = vmatpush3.bf16.msra.mxu0 %v1125_v9  ;;  %1019 = vmatpush3.bf16.msra.mxu1 %v1143_v25 }
  0x7b   :  { %1000 = vmatprep.subr.bf16.mxu0 %v1371_v0  ;;  %1020 = vmatprep.subr.bf16.mxu1 %v1371_v0 }
  0x7e   :  { %1001 = vmatpush3.bf16.msra.mxu0 %v1126_v11  ;;  %1021 = vmatpush3.bf16.msra.mxu1 %v1144_v26 }
  0x7f   :  { %1026 = vmatprep.subr.bf16.mxu0 %v1371_v0  ;;  %1046 = vmatprep.subr.bf16.mxu1 %v1371_v0 }
  0x81   :  { %1003 = vmatmul.mubr.bf16.vlgmr.msra.gmra.mxu0 %v1127_v13 }
  0x82   :  { %1027 = vmatpush3.bf16.msra.mxu0 %v1128_v14  ;;  %1042 = vmatprep.mubr.msk.bf16.mxu0 %vm1372_vm0, %v1371_v0 }
  0x83   :  { %1028 = vmatprep.subr.bf16.mxu0 %v1371_v0 }
  0x86   :  { %1029 = vmatpush3.bf16.msra.mxu0 %v1129_v16 }
  0x87   :  { %1030 = vmatprep.subr.bf16.mxu0 %v1371_v0 }
  0x8a   :  { %1031 = vmatpush3.bf16.msra.mxu0 %v1130_v17 }
  0x8b   :  { %1032 = vmatprep.subr.bf16.mxu0 %v1371_v0 }
  0x8e   :  { %1033 = vmatpush3.bf16.msra.mxu0 %v1131_v18 }
  0x8f   :  { %1034 = vmatprep.subr.bf16.mxu0 %v1371_v0 }
  0x92   :  { %1035 = vmatpush3.bf16.msra.mxu0 %v1132_v19 }
  0x93   :  { %1036 = vmatprep.subr.bf16.mxu0 %v1371_v0 }
  0x96   :  { %1037 = vmatpush3.bf16.msra.mxu0 %v1133_v20 }
  0x97   :  { %1038 = vmatprep.subr.bf16.mxu0 %v1371_v0 }
  0x9a   :  { %1039 = vmatpush3.bf16.msra.mxu0 %v1134_v21 }
  0x9b   :  { %1040 = vmatprep.subr.bf16.mxu0 %v1371_v0 }
  0x9e   :  { %1041 = vmatpush3.bf16.msra.mxu0 %v1135_v22 }
  0x9f   :  { %1066 = vmatprep.subr.bf16.mxu0 %v1371_v0 }
  0xa1   :  { %1043 = vmatmul.mubr.bf16.vlgmr.msra.gmra.mxu0 %v1136_v23 }
  0xa2   :  { %1082 = vmatprep.mubr.msk.bf16.mxu0 %vm1372_vm0, %v1371_v0  ;;  %1067 = vmatpush3.bf16.msra.mxu0 %v1161_v63 }
  0xa3   :  { %1068 = vmatprep.subr.bf16.mxu0 %v1371_v0 }
  0xa6   :  { %1069 = vmatpush3.bf16.msra.mxu0 %v1162_v1 }
  0xa7   :  { %1070 = vmatprep.subr.bf16.mxu0 %v1371_v0 }
  0xaa   :  { %1071 = vmatpush3.bf16.msra.mxu0 %v1163_v2 }
  0xab   :  { %1072 = vmatprep.subr.bf16.mxu0 %v1371_v0 }
  0xae   :  { %1073 = vmatpush3.bf16.msra.mxu0 %v1164_v3 }
  0xaf   :  { %1074 = vmatprep.subr.bf16.mxu0 %v1371_v0 }
  0xb2   :  { %1075 = vmatpush3.bf16.msra.mxu0 %v1165_v4 }
  0xb3   :  { %1076 = vmatprep.subr.bf16.mxu0 %v1371_v0 }
  0xb6   :  { %1077 = vmatpush3.bf16.msra.mxu0 %v1166_v5 }
  0xb7   :  { %1078 = vmatprep.subr.bf16.mxu0 %v1371_v0 }
  0xba   :  { %1079 = vmatpush3.bf16.msra.mxu0 %v1167_v6 }
  0xbb   :  { %1080 = vmatprep.subr.bf16.mxu0 %v1371_v0 }
  0xbe   :  { %1081 = vmatpush3.bf16.msra.mxu0 %v1168_v7 }
 0x141   :  { %v282_v28 = vpop.f32.mrf.mxu0 }
 0x142   :  { %v283_v30 = vadd.f32 %v869_v27, %v282_v28 }
 0x143   :  { %v1004_v29 = vpop.f32.mrf.mxu0 }
 0x144   :  { %v289_v34 = vmax.f32 %v283_v30, 0.0 }
 0x145   :  { %v285_v31 = vpop.f32.mrf.mxu0 }
 0x146   :  { %v286_v32 = vadd.f32 %v869_v27, %v285_v31 }
 0x147   :  { %v1005_v33 = vpop.f32.mrf.mxu0 }
 0x148   :  { %v290_v35 = vmax.f32 %v286_v32, 0.0 }
 0x14a   :  { %v291_v37 = vpack.c.bf16 %v290_v35, %v289_v34 }
 0x14c   :  { %1023 = vmatmul.mubr.bf16.vlgmr.msra.gmra.mxu1 %v291_v37 }
 0x14d   :  { %1047 = vmatpush3.bf16.msra.mxu1 %v1145_v36  ;;  %1062 = vmatprep.mubr.msk.bf16.mxu1 %vm1372_vm0, %v1371_v0 }
 0x14e   :  { %1048 = vmatprep.subr.bf16.mxu1 %v1371_v0 }
 0x151   :  { %1049 = vmatpush3.bf16.msra.mxu1 %v1146_v38 }
 0x152   :  { %1050 = vmatprep.subr.bf16.mxu1 %v1371_v0 }
 0x155   :  { %1051 = vmatpush3.bf16.msra.mxu1 %v1147_v39 }
 0x156   :  { %1052 = vmatprep.subr.bf16.mxu1 %v1371_v0 }
 0x159   :  { %1053 = vmatpush3.bf16.msra.mxu1 %v1148_v40 }
 0x15a   :  { %1054 = vmatprep.subr.bf16.mxu1 %v1371_v0 }
 0x15d   :  { %1055 = vmatpush3.bf16.msra.mxu1 %v1149_v41 }
 0x15e   :  { %1056 = vmatprep.subr.bf16.mxu1 %v1371_v0 }
 0x161   :  { %v520_v44 = vpop.f32.mrf.mxu0  ;;  %1057 = vmatpush3.bf16.msra.mxu1 %v1150_v42 }
 0x162   :  { %1058 = vmatprep.subr.bf16.mxu1 %v1371_v0  ;;  %v521_v47 = vadd.f32 %v888_v43, %v520_v44 }
 0x163   :  { %v1044_v46 = vpop.f32.mrf.mxu0 }
 0x164   :  { %v527_v52 = vmax.f32 %v521_v47, 0.0 }
 0x165   :  { %v523_v48 = vpop.f32.mrf.mxu0  ;;  %1059 = vmatpush3.bf16.msra.mxu1 %v1151_v45 }
 0x166   :  { %v524_v50 = vadd.f32 %v888_v43, %v523_v48  ;;  %1060 = vmatprep.subr.bf16.mxu1 %v1371_v0 }
 0x167   :  { %v1045_v51 = vpop.f32.mrf.mxu0 }
 0x168   :  { %v528_v53 = vmax.f32 %v524_v50, 0.0 }
 0x169   :  { %1061 = vmatpush3.bf16.msra.mxu1 %v1152_v49 }
 0x16a   :  { %v529_v55 = vpack.c.bf16 %v528_v53, %v527_v52  ;;  %1086 = vmatprep.subr.bf16.mxu1 %v1371_v0 }
 0x16c   :  { %1063 = vmatmul.mubr.bf16.vlgmr.msra.gmra.mxu1 %v529_v55 }
 0x16d   :  { %1087 = vmatpush3.bf16.msra.mxu1 %v1153_v54  ;;  %1102 = vmatprep.mubr.msk.bf16.mxu1 %vm1372_vm0, %v1371_v0 }
 0x16e   :  { %1088 = vmatprep.subr.bf16.mxu1 %v1371_v0 }
 0x171   :  { %1089 = vmatpush3.bf16.msra.mxu1 %v1154_v56 }
 0x172   :  { %1090 = vmatprep.subr.bf16.mxu1 %v1371_v0 }
 0x175   :  { %1091 = vmatpush3.bf16.msra.mxu1 %v1155_v57 }
 0x176   :  { %1092 = vmatprep.subr.bf16.mxu1 %v1371_v0 }
 0x179   :  { %1093 = vmatpush3.bf16.msra.mxu1 %v1156_v58 }
 0x17a   :  { %1094 = vmatprep.subr.bf16.mxu1 %v1371_v0 }
 0x17d   :  { %1095 = vmatpush3.bf16.msra.mxu1 %v1157_v59 }
 0x17e   :  { %1096 = vmatprep.subr.bf16.mxu1 %v1371_v0 }
 0x181   :  { %1097 = vmatpush3.bf16.msra.mxu1 %v1158_v60 }
 0x182   :  { %1098 = vmatprep.subr.bf16.mxu1 %v1371_v0 }
 0x185   :  { %1099 = vmatpush3.bf16.msra.mxu1 %v1159_v61 }
 0x186   :  { %1100 = vmatprep.subr.bf16.mxu1 %v1371_v0  ;;  %v898_v0 = vld [vmem:[%s1574_s9] ss:$0 sm:$0xff]  ;;  %s1329_s9 = scalar_lea.vmem %s854_s25, 128 }
 0x187   :  { %p1330_p12 = scmp.ne.s32.totalorder %s854_s25, %s1329_s9  ;;  %p1335_p0 = scmp.lt.s32.totalorder %s1329_s9, %s1329_s9 }
 0x189   :  { %1101 = vmatpush3.bf16.msra.mxu1 %v1160_v62  ;;  %p1336_p1 = por %p1335_p0, %p1334_p13 }
 0x18b   :  { %p1337_p2 = pnand %p1336_p1, %p1330_p12 }
 0x20c   :  { %v380_v9 = vpop.f32.mrf.mxu1 }
 0x20d   :  { %v381_v11 = vadd.f32 %v879_v8, %v380_v9 }
 0x20e   :  { %v1024_v10 = vpop.f32.mrf.mxu1 }
 0x20f   :  { %v387_v15 = vmax.f32 %v381_v11, 0.0 }
 0x210   :  { %v383_v12 = vpop.f32.mrf.mxu1 }
 0x211   :  { %v384_v13 = vadd.f32 %v879_v8, %v383_v12 }
 0x212   :  { %v1025_v14 = vpop.f32.mrf.mxu1 }
 0x213   :  { %v388_v16 = vmax.f32 %v384_v13, 0.0 }
 0x215   :  { %v389_v17 = vpack.c.bf16 %v388_v16, %v387_v15 }
 0x217   :  { %1103 = vmatmul.mubr.bf16.vlgmr.msra.gmra.mxu1 %v389_v17 }
 0x22c   :  { %v618_v18 = vpop.f32.mrf.mxu1 }
 0x22d   :  { %v619_v20 = vadd.f32 %v898_v0, %v618_v18 }
 0x22e   :  { %v1064_v19 = vpop.f32.mrf.mxu1 }
 0x22f   :  { %v625_v24 = vmax.f32 %v619_v20, 0.0 }
 0x230   :  { %v621_v21 = vpop.f32.mrf.mxu1 }
 0x231   :  { %v622_v22 = vadd.f32 %v898_v0, %v621_v21 }
 0x232   :  { %v1065_v23 = vpop.f32.mrf.mxu1 }
 0x233   :  { %v626_v25 = vmax.f32 %v622_v22, 0.0 }
 0x235   :  { %v627_v26 = vpack.c.bf16 %v626_v25, %v625_v24 }
 0x237   :  { %1083 = vmatmul.mubr.bf16.vlgmr.msra.gmra.mxu0 %v627_v26 }
 0x2d7   :  { %v831_v27 = vpop.f32.mrf.mxu1 }
 0x2d9   :  { %v1104_v28 = vpop.f32.mrf.mxu1 }
 0x2db   :  { %v834_v29 = vpop.f32.mrf.mxu1 }
 0x2dd   :  { %v1105_v30 = vpop.f32.mrf.mxu1 }
 0x2f7   :  { %v742_v31 = vpop.f32.mrf.mxu0 }
 0x2f8   :  { %v832_v34 = vadd.f32 %v831_v27, %v742_v31 }
 0x2f9   :  { %v1084_v32 = vpop.f32.mrf.mxu0 }
 0x2fb   :  { %v745_v33 = vpop.f32.mrf.mxu0 }
 0x2fc   :  { %v835_v35 = vadd.f32 %v834_v29, %v745_v33 }
 0x2fd   :  { %v1085_v36 = vpop.f32.mrf.mxu0 }
 0x2fe   :  { %v930_v37 = vpack.c.bf16 %v835_v35, %v832_v34 }
 0x300   :  { %931 = vst [vmem:[#allocation16] sm:$0xff] %v930_v37  }
 0x301   :  { %1340 = shalt.err (!%p1337_p2)
}
 0x302   :  { %859 = dma.vmem_to_hbm [thread:$0]  %s854_s25, 128, %s1577_s12, [#allocation4], %s1363_s26, %s1363_s26, %s1364_s27  }
 0x303   :  { %1359 = dma.done.wait [#allocation4], 128  }
 0x304   :  { %1360 = vsyncadd [#allocation4], 4294967168 }
 0x305   :  { %863 = vsyncpa [#allocation3], 1 }
 0x306   :  { %864 = vsyncpa [#allocation6], 1 }
 0x307   :  { %865 = vsyncpa [#allocation9], 1 }
 0x308   :  { %866 = vsyncpa [#allocation12], 1 }
 0x309   :  { %867 = vsyncpa [#allocation15], 1 }
 0x30a   :  { %868 = vsyncpa [#allocation4], 1 }

</bundles_post_ra>
